<compile_context>
chip_gen: v7x
topology: tpu7x:2x2x1
jax: 0.10.0
libtpu: 0.0.40
codegen_flags: <defaults>
</compile_context>

<pallas_src>
import jax
import jax.numpy as jnp
from jax.experimental import pallas as pl
from jax.experimental.pallas import tpu as pltpu
import numpy as np


# ---------------------------------------------------------------------------
# Kernel 1: streaming class-wise max over ROIs + tiny 2-layer GCN finalize.
#   y2  : (1,128) lane-tiled x1' (class c replicated at every lane q, q%C==c)
#   reg : (1,1)   sum((x1' - 1)^2)
# ---------------------------------------------------------------------------
def make_reduce_gcn_kernel(num_classes):
    C = num_classes
    # Lane-roll shifts that fold the 128/C replicated class groups together.
    fold_shifts = []
    s = 64
    while s >= C:
        fold_shifts.append(s)
        s //= 2

    def kernel(roi_ref, adjm_ref, params_ref, y2_ref, reg_ref, max_sc):
        i = pl.program_id(0)

        @pl.when(i == 0)
        def _():
            max_sc[...] = jnp.full_like(max_sc, -jnp.inf)

        # Sublane reduce first (result = 1 vreg); lane folds happen once at the
        # end on the accumulated vreg instead of on every roi vreg.
        blk_max = jnp.max(roi_ref[...], axis=0, keepdims=True)          # (1,128)
        max_sc[...] = jnp.maximum(max_sc[...], blk_max)

        @pl.when(i == pl.num_programs(0) - 1)
        def _():
            x = max_sc[...]                                              # (1,128)
            for shift in fold_shifts:
                x = jnp.maximum(x, pltpu.roll(x, shift, 1))              # tiled class max

            p = params_ref[...]                                          # (H,4)
            w1c = p[:, 0:1]                                              # (H,1) W1
            b1c = p[:, 1:2]                                              # (H,1) b1
            w2c = p[:, 2:3]                                              # (H,1) W2
            b2 = p[0:1, 3:4]                                             # (1,1) b2

            # (C,128) tiled operator from HBM; zero-pad to (128,128) in VMEM so
            # the replicated lanes of x hit zero rows and MXU shapes stay clean.
            adjm = adjm_ref[...]                                         # (C,128)
            if C < 128:
                adjm = jnp.concatenate(
                    [adjm, jnp.zeros((128 - C, 128), jnp.float32)], axis=0)

            # gc1 (rank-1): adj @ (x1 @ W1) == (adj @ x1) outer W1
            a = jnp.dot(x, adjm, preferred_element_type=jnp.float32)     # (1,128)
            y1 = jnp.maximum(w1c * a + b1c, 0.0)                         # (H,128)

            # gc2: W2-weighted sublane reduce + one more adj matvec
            s2 = jnp.sum(w2c * y1, axis=0, keepdims=True)                # (1,128)
            y2 = jnp.dot(s2, adjm, preferred_element_type=jnp.float32) + b2
            y2 = jnp.maximum(y2, 0.0)                                    # (1,128)
            y2_ref[...] = y2

            lane = jax.lax.broadcasted_iota(jnp.int32, (1, 128), 1)
            d = jnp.where(lane < C, y2 - 1.0, 0.0)
            reg_ref[...] = jnp.sum(d * d, keepdims=True)

    return kernel


# ---------------------------------------------------------------------------
# Kernel 2: lane-dense elementwise re-weighting, pipelined & parallel over F.
# ---------------------------------------------------------------------------
def scale_kernel(roi_ref, y2_ref, out_ref):
    out_ref[...] = roi_ref[...] * y2_ref[...]


# ---------------------------------------------------------------------------
# Parameter prep (runs once per parameter set; hoisted out of the jitted call).
# ---------------------------------------------------------------------------
def gen_A(num_classes, t, key):
    # TODO(synk): original gen_A loads a pickle adj_file; co-occurrence stats
    # are synthesized deterministically here, then the same transform applied.
    k1, k2 = jax.random.split(key)
    nums = jax.random.randint(k1, (num_classes,), 5, 50).astype(jnp.float32)
    raw = jax.random.randint(k2, (num_classes, num_classes), 0, 40).astype(jnp.float32)
    _adj = raw / nums[:, None]
    _adj = (_adj >= t).astype(jnp.float32)
    _adj = _adj * 0.25 / (_adj.sum(0, keepdims=True) + 1e-6)
    _adj = _adj + jnp.eye(num_classes, dtype=jnp.float32)
    return _adj


def gen_adj(A):
    # D = diag(A.sum(1) ** -0.5); adj = (A @ D)^T @ D; adj[0,0] = 0
    d = jnp.power(jnp.sum(A, axis=1), -0.5)
    adj = (A * d[None, :]).T * d[None, :]
    adj = adj.at[0, 0].set(0.0)
    return adj


def make_cgcn_params(num_classes, n_hid, key):
    kA, k1, k2, k3, k4 = jax.random.split(key, 5)
    A = gen_A(num_classes, t=0.4, key=kA)
    stdv1 = 1.0 / np.sqrt(n_hid)
    W1 = jax.random.uniform(k1, (1, n_hid), jnp.float32, -stdv1, stdv1)
    b1 = jax.random.uniform(k2, (n_hid,), jnp.float32, -stdv1, stdv1)
    stdv2 = 1.0  # out_features = n_feat = 1
    W2 = jax.random.uniform(k3, (n_hid, 1), jnp.float32, -stdv2, stdv2)
    b2 = jax.random.uniform(k4, (1,), jnp.float32, -stdv2, stdv2)
    return A, W1, b1, W2, b2


def prepare_cgcn(A, W1, b1, W2, b2):
    """One-time prep: (C,128) tiled adjacency operator + packed (H,4) params."""
    C = A.shape[0]
    H = W1.shape[1]
    # TODO(synk): lane-tiling assumes power-of-2 C dividing 128; class counts
    # like 21/81 would need a padded-C variant.
    assert 128 % C == 0 and (C & (C - 1)) == 0, "num_classes must be a power of 2 dividing 128"
    G = 128 // C
    adjT = gen_adj(A).T                                     # (C,C)
    adjm = jnp.tile(adjT, (1, G))                           # (C,128) = [adjT|adjT|...]
    params = jnp.stack(
        [W1.reshape(H), b1.reshape(H), W2.reshape(H),
         jnp.broadcast_to(b2.reshape(()), (H,))], axis=1)   # (H,4)
    return adjm, params


def _row_block(F):
    # Largest convenient divisor of F for the (rows,128) blocks, capped at 1024.
    if F <= 1024:
        return F
    for cand in (1024, 512, 256, 128, 64, 32, 16, 8):
        if F % cand == 0:
            return cand
    return F  # fall back to a single block


@jax.jit
def cgcn_forward(roi_scores, adjm, params):
    R, C = roi_scores.shape
    H = params.shape[0]
    assert adjm.shape == (C, 128)
    assert (R * C) % 128 == 0, "num_rois * num_classes must be a multiple of 128"
    F = (R * C) // 128
    TF = _row_block(F)
    nblk = F // TF

    roi_flat = roi_scores.reshape(F, 128)                   # free contiguous reshape

    reduce_cost = pl.CostEstimate(
        flops=R * C + 2 * 2 * 128 * 128 + 4 * H * 128,
        transcendentals=0,
        bytes_accessed=R * C * 4 + C * 128 * 4 + H * 4 * 4 + 128 * 4 + 4,
    )
    y2, reg = pl.pallas_call(
        make_reduce_gcn_kernel(C),
        out_shape=(jax.ShapeDtypeStruct((1, 128), jnp.float32),
                   jax.ShapeDtypeStruct((1, 1), jnp.float32)),
        grid_spec=pltpu.PrefetchScalarGridSpec(
            num_scalar_prefetch=0,
            grid=(nblk,),
            in_specs=[pl.BlockSpec((TF, 128), lambda i: (i, 0)),
                      pl.BlockSpec((C, 128), lambda i: (0, 0)),
                      pl.BlockSpec((H, 4), lambda i: (0, 0))],
            out_specs=(pl.BlockSpec((1, 128), lambda i: (0, 0)),
                       pl.BlockSpec((1, 1), lambda i: (0, 0))),
            scratch_shapes=[pltpu.VMEM((1, 128), jnp.float32)],
        ),
        compiler_params=pltpu.CompilerParams(dimension_semantics=("arbitrary",)),
        cost_estimate=reduce_cost,
    )(roi_flat, adjm, params)

    scale_cost = pl.CostEstimate(
        flops=R * C,
        transcendentals=0,
        bytes_accessed=2 * R * C * 4 + 128 * 4,
    )
    out_flat = pl.pallas_call(
        scale_kernel,
        out_shape=jax.ShapeDtypeStruct((F, 128), jnp.float32),
        grid_spec=pltpu.PrefetchScalarGridSpec(
            num_scalar_prefetch=0,
            grid=(nblk,),
            in_specs=[pl.BlockSpec((TF, 128), lambda i: (i, 0)),
                      pl.BlockSpec((1, 128), lambda i: (0, 0))],
            out_specs=pl.BlockSpec((TF, 128), lambda i: (i, 0)),
        ),
        compiler_params=pltpu.CompilerParams(dimension_semantics=("parallel",)),
        cost_estimate=scale_cost,
    )(roi_flat, y2)

    return out_flat.reshape(R, C), reg[0, 0]


def cgcn_reference(roi_scores, A, W1, b1, W2, b2):
    # Pure-JAX reference mirroring the PyTorch forward.
    adj = gen_adj(A)
    x1 = jnp.max(roi_scores, axis=0).reshape(-1, 1)          # (C,1)
    h1 = jax.nn.relu(adj @ (x1 @ W1) + b1)                   # (C,H)
    x1p = jax.nn.relu(adj @ (h1 @ W2) + b2)                  # (C,1)
    out = roi_scores * x1p.reshape(1, -1)
    reg = jnp.sum((x1p - 1.0) ** 2)
    return out, reg


if __name__ == "__main__":
    num_rois = 64
    num_classes = 16
    n_hid = 32

    key = jax.random.PRNGKey(0)
    k_roi, k_par = jax.random.split(key)
    roi_scores = jax.random.uniform(k_roi, (num_rois, num_classes), jnp.float32)
    A, W1, b1, W2, b2 = make_cgcn_params(num_classes, n_hid, k_par)

    # One-time parameter prep (cached across calls), jitted forward per call.
    adjm, params = prepare_cgcn(A, W1, b1, W2, b2)
    out, reg = cgcn_forward(roi_scores, adjm, params)
    out = jax.block_until_ready(out)
    reg = jax.block_until_ready(reg)

    ref_out, ref_reg = cgcn_reference(roi_scores, A, W1, b1, W2, b2)
    np.testing.assert_allclose(np.asarray(out), np.asarray(ref_out), rtol=1e-5, atol=1e-5)
    np.testing.assert_allclose(np.asarray(reg), np.asarray(ref_reg), rtol=1e-5, atol=1e-5)

    print("KERNEL_OK")
</pallas_src>

<mosaic_0001>
module attributes {stable_mosaic.version = 11 : i64} {
  func.func @kernel(%arg0: i32, %arg1: memref<8x128xf32, #tpu.memory_space<vmem>>, %arg2: memref<16x128xf32, #tpu.memory_space<vmem>>, %arg3: memref<32x4xf32, #tpu.memory_space<vmem>>, %arg4: memref<1x128xf32, #tpu.memory_space<vmem>>, %arg5: memref<1x1xf32, #tpu.memory_space<vmem>>, %arg6: memref<1x128xf32, #tpu.memory_space<vmem>>) attributes {dimension_semantics = [#tpu.dimension_semantics<arbitrary>], iteration_bounds = array<i64: 1>, scalar_prefetch = 0 : i64, scratch_operands = 1 : i64, tpu.core_type = #tpu.core_type<tc>, window_params = [{transform_indices = @transform_0, window_bounds = array<i64: 8, 128>}, {pipeline_mode = #tpu.pipeline_mode<synchronous>, transform_indices = @transform_1, window_bounds = array<i64: 16, 128>}, {pipeline_mode = #tpu.pipeline_mode<synchronous>, transform_indices = @transform_2, window_bounds = array<i64: 32, 4>}, {pipeline_mode = #tpu.pipeline_mode<synchronous>, transform_indices = @transform_3, window_bounds = array<i64: 1, 128>}, {pipeline_mode = #tpu.pipeline_mode<synchronous>, transform_indices = @transform_4, window_bounds = array<i64: 1, 1>}]} {
    %c0_i32 = arith.constant 0 : i32
    %0 = arith.cmpi eq, %arg0, %c0_i32 : i32
    %1 = arith.extui %0 : i1 to i32
    %c0_i32_0 = arith.constant 0 : i32
    %2 = arith.cmpi ne, %1, %c0_i32_0 : i32
    scf.if %2 {
      %cst_8 = arith.constant 0xFF800000 : f32
      %12 = vector.broadcast %cst_8 : f32 to vector<1x128xf32>
      %c0_9 = arith.constant 0 : index
      %c0_10 = arith.constant 0 : index
      %13 = vector.load %arg6[%c0_9, %c0_10] : memref<1x128xf32, #tpu.memory_space<vmem>>, vector<1x128xf32>
      tpu.vector_store %arg6[%c0_9, %c0_10], %12 {strides = array<i32>} : memref<1x128xf32, #tpu.memory_space<vmem>>, vector<1x128xf32>,
    } else {
    }
    %c0 = arith.constant 0 : index
    %c0_1 = arith.constant 0 : index
    %3 = vector.load %arg1[%c0, %c0_1] : memref<8x128xf32, #tpu.memory_space<vmem>>, vector<8x128xf32>
    %cst = arith.constant dense<0xFF800000> : vector<128xf32>
    %4 = vector.multi_reduction <maximumf>, %3, %cst [0] : vector<8x128xf32> to vector<128xf32>
    %5 = vector.shape_cast %4 : vector<128xf32> to vector<1x128xf32>
    %c0_2 = arith.constant 0 : index
    %c0_3 = arith.constant 0 : index
    %6 = vector.load %arg6[%c0_2, %c0_3] : memref<1x128xf32, #tpu.memory_space<vmem>>, vector<1x128xf32>
    %7 = arith.maximumf %6, %5 : vector<1x128xf32>
    %c0_4 = arith.constant 0 : index
    %c0_5 = arith.constant 0 : index
    %8 = vector.load %arg6[%c0_4, %c0_5] : memref<1x128xf32, #tpu.memory_space<vmem>>, vector<1x128xf32>
    tpu.vector_store %arg6[%c0_4, %c0_5], %7 {strides = array<i32>} : memref<1x128xf32, #tpu.memory_space<vmem>>, vector<1x128xf32>,
    %c0_i32_6 = arith.constant 0 : i32
    %9 = arith.cmpi eq, %arg0, %c0_i32_6 : i32
    %10 = arith.extui %9 : i1 to i32
    %c0_i32_7 = arith.constant 0 : i32
    %11 = arith.cmpi ne, %10, %c0_i32_7 : i32
    scf.if %11 {
      %c0_8 = arith.constant 0 : index
      %c0_9 = arith.constant 0 : index
      %12 = vector.load %arg6[%c0_8, %c0_9] : memref<1x128xf32, #tpu.memory_space<vmem>>, vector<1x128xf32>
      %c64_i32 = arith.constant 64 : i32
      %13 = tpu.dynamic_rotate %12 by %c64_i32 dim 1 : vector<1x128xf32>, i32 -> vector<1x128xf32>
      %14 = arith.maximumf %12, %13 : vector<1x128xf32>
      %c32_i32 = arith.constant 32 : i32
      %15 = tpu.dynamic_rotate %14 by %c32_i32 dim 1 : vector<1x128xf32>, i32 -> vector<1x128xf32>
      %16 = arith.maximumf %14, %15 : vector<1x128xf32>
      %c16_i32 = arith.constant 16 : i32
      %17 = tpu.dynamic_rotate %16 by %c16_i32 dim 1 : vector<1x128xf32>, i32 -> vector<1x128xf32>
      %18 = arith.maximumf %16, %17 : vector<1x128xf32>
      %c0_10 = arith.constant 0 : index
      %c0_11 = arith.constant 0 : index
      %19 = vector.load %arg3[%c0_10, %c0_11] : memref<32x4xf32, #tpu.memory_space<vmem>>, vector<32x4xf32>
      %20 = vector.extract_strided_slice %19 {offsets = [0, 0], sizes = [32, 1], strides = [1, 1]} : vector<32x4xf32> to vector<32x1xf32>
      %21 = vector.extract_strided_slice %19 {offsets = [0, 1], sizes = [32, 1], strides = [1, 1]} : vector<32x4xf32> to vector<32x1xf32>
      %22 = vector.extract_strided_slice %19 {offsets = [0, 2], sizes = [32, 1], strides = [1, 1]} : vector<32x4xf32> to vector<32x1xf32>
      %23 = vector.extract_strided_slice %19 {offsets = [0, 3], sizes = [1, 1], strides = [1, 1]} : vector<32x4xf32> to vector<1x1xf32>
      %c0_12 = arith.constant 0 : index
      %c0_13 = arith.constant 0 : index
      %24 = vector.load %arg2[%c0_12, %c0_13] : memref<16x128xf32, #tpu.memory_space<vmem>>, vector<16x128xf32>
      %cst_14 = arith.constant 0.000000e+00 : f32
      %25 = vector.broadcast %cst_14 : f32 to vector<112x128xf32>
      %26 = tpu.concatenate %24, %25 in 0 : vector<16x128xf32>, vector<112x128xf32> -> vector<128x128xf32>
      %cst_15 = arith.constant dense<0.000000e+00> : vector<1x128xf32>
      %27 = tpu.matmul %18, %26, %cst_15 {dimension_numbers = #tpu.dot_dimension_numbers<[1], [0], [0], [1], [0, 0, 1, 1], [], []>} : vector<1x128xf32>, vector<128x128xf32>, vector<1x128xf32> -> vector<1x128xf32>
      %28 = vector.broadcast %20 : vector<32x1xf32> to vector<32x128xf32>
      %29 = vector.broadcast %27 : vector<1x128xf32> to vector<32x128xf32>
      %30 = arith.mulf %28, %29 : vector<32x128xf32>
      %31 = vector.broadcast %21 : vector<32x1xf32> to vector<32x128xf32>
      %32 = arith.addf %30, %31 : vector<32x128xf32>
      %cst_16 = arith.constant 0.000000e+00 : f32
      %33 = vector.broadcast %cst_16 : f32 to vector<32x128xf32>
      %34 = arith.maximumf %32, %33 : vector<32x128xf32>
      %35 = vector.broadcast %22 : vector<32x1xf32> to vector<32x128xf32>
      %36 = arith.mulf %35, %34 : vector<32x128xf32>
      %cst_17 = arith.constant dense<0.000000e+00> : vector<128xf32>
      %37 = vector.multi_reduction <add>, %36, %cst_17 [0] : vector<32x128xf32> to vector<128xf32>
      %38 = vector.shape_cast %37 : vector<128xf32> to vector<1x128xf32>
      %cst_18 = arith.constant dense<0.000000e+00> : vector<1x128xf32>
      %39 = tpu.matmul %38, %26, %cst_18 {dimension_numbers = #tpu.dot_dimension_numbers<[1], [0], [0], [1], [0, 0, 1, 1], [], []>} : vector<1x128xf32>, vector<128x128xf32>, vector<1x128xf32> -> vector<1x128xf32>
      %40 = vector.broadcast %23 : vector<1x1xf32> to vector<1x128xf32>
      %41 = arith.addf %39, %40 : vector<1x128xf32>
      %cst_19 = arith.constant 0.000000e+00 : f32
      %42 = vector.broadcast %cst_19 : f32 to vector<1x128xf32>
      %43 = arith.maximumf %41, %42 : vector<1x128xf32>
      %c0_20 = arith.constant 0 : index
      %c0_21 = arith.constant 0 : index
      %44 = vector.load %arg4[%c0_20, %c0_21] : memref<1x128xf32, #tpu.memory_space<vmem>>, vector<1x128xf32>
      tpu.vector_store %arg4[%c0_20, %c0_21], %43 {strides = array<i32>} : memref<1x128xf32, #tpu.memory_space<vmem>>, vector<1x128xf32>,
      %45 = tpu.iota {dimensions = array<i32: 1>} : vector<1x128xi32>
      %c16_i32_22 = arith.constant 16 : i32
      %46 = vector.broadcast %c16_i32_22 : i32 to vector<1x128xi32>
      %47 = arith.cmpi slt, %45, %46 : vector<1x128xi32>
      %cst_23 = arith.constant 1.000000e+00 : f32
      %48 = vector.broadcast %cst_23 : f32 to vector<1x128xf32>
      %49 = arith.subf %43, %48 : vector<1x128xf32>
      %cst_24 = arith.constant 0.000000e+00 : f32
      %50 = vector.broadcast %cst_24 : f32 to vector<1x128xf32>
      %51 = arith.select %47, %49, %50 : vector<1x128xi1>, vector<1x128xf32>
      %52 = arith.mulf %51, %51 : vector<1x128xf32>
      %53 = vector.shape_cast %52 : vector<1x128xf32> to vector<1x1x128xf32>
      %cst_25 = arith.constant dense<0.000000e+00> : vector<1xf32>
      %54 = vector.multi_reduction <add>, %53, %cst_25 [1, 2] : vector<1x1x128xf32> to vector<1xf32>
      %55 = vector.shape_cast %54 : vector<1xf32> to vector<1x1x1xf32>
      %56 = vector.extract %55[0, 0, 0] : f32 from vector<1x1x1xf32>
      %57 = vector.broadcast %56 : f32 to vector<1x1xf32>
      %c0_26 = arith.constant 0 : index
      %c0_27 = arith.constant 0 : index
      %58 = vector.load %arg5[%c0_26, %c0_27] : memref<1x1xf32, #tpu.memory_space<vmem>>, vector<1x1xf32>
      tpu.vector_store %arg5[%c0_26, %c0_27], %57 {strides = array<i32>} : memref<1x1xf32, #tpu.memory_space<vmem>>, vector<1x1xf32>,
    } else {
    }
    return
  }
  func.func @transform_0(%arg0: i32) -> (i32, i32) {
    %c0_i32 = arith.constant 0 : i32
    %c0_i32_0 = arith.constant 0 : i32
    return %arg0, %c0_i32 : i32, i32
  }
  func.func @transform_1(%arg0: i32) -> (i32, i32) {
    %c0_i32 = arith.constant 0 : i32
    %c0_i32_0 = arith.constant 0 : i32
    %c0_i32_1 = arith.constant 0 : i32
    return %c0_i32, %c0_i32_0 : i32, i32
  }
  func.func @transform_2(%arg0: i32) -> (i32, i32) {
    %c0_i32 = arith.constant 0 : i32
    %c0_i32_0 = arith.constant 0 : i32
    %c0_i32_1 = arith.constant 0 : i32
    return %c0_i32, %c0_i32_0 : i32, i32
  }
  func.func @transform_3(%arg0: i32) -> (i32, i32) {
    %c0_i32 = arith.constant 0 : i32
    %c0_i32_0 = arith.constant 0 : i32
    %c0_i32_1 = arith.constant 0 : i32
    return %c0_i32, %c0_i32_0 : i32, i32
  }
  func.func @transform_4(%arg0: i32) -> (i32, i32) {
    %c0_i32 = arith.constant 0 : i32
    %c0_i32_0 = arith.constant 0 : i32
    %c0_i32_1 = arith.constant 0 : i32
    return %c0_i32, %c0_i32_0 : i32, i32
  }
}

module attributes {stable_mosaic.version = 11 : i64} {
  func.func @scale_kernel(%arg0: i32, %arg1: memref<8x128xf32, #tpu.memory_space<vmem>>, %arg2: memref<1x128xf32, #tpu.memory_space<vmem>>, %arg3: memref<8x128xf32, #tpu.memory_space<vmem>>) attributes {dimension_semantics = [#tpu.dimension_semantics<parallel>], iteration_bounds = array<i64: 1>, scalar_prefetch = 0 : i64, scratch_operands = 0 : i64, tpu.core_type = #tpu.core_type<tc>, window_params = [{transform_indices = @transform_0, window_bounds = array<i64: 8, 128>}, {pipeline_mode = #tpu.pipeline_mode<synchronous>, transform_indices = @transform_1, window_bounds = array<i64: 1, 128>}, {transform_indices = @transform_2, window_bounds = array<i64: 8, 128>}]} {
    %c0 = arith.constant 0 : index
    %c0_0 = arith.constant 0 : index
    %0 = vector.load %arg1[%c0, %c0_0] : memref<8x128xf32, #tpu.memory_space<vmem>>, vector<8x128xf32>
    %c0_1 = arith.constant 0 : index
    %c0_2 = arith.constant 0 : index
    %1 = vector.load %arg2[%c0_1, %c0_2] : memref<1x128xf32, #tpu.memory_space<vmem>>, vector<1x128xf32>
    %2 = vector.broadcast %1 : vector<1x128xf32> to vector<8x128xf32>
    %3 = arith.mulf %0, %2 : vector<8x128xf32>
    %c0_3 = arith.constant 0 : index
    %c0_4 = arith.constant 0 : index
    %4 = vector.load %arg3[%c0_3, %c0_4] : memref<8x128xf32, #tpu.memory_space<vmem>>, vector<8x128xf32>
    tpu.vector_store %arg3[%c0_3, %c0_4], %3 {strides = array<i32>} : memref<8x128xf32, #tpu.memory_space<vmem>>, vector<8x128xf32>,
    return
  }
  func.func @transform_0(%arg0: i32) -> (i32, i32) {
    %c0_i32 = arith.constant 0 : i32
    %c0_i32_0 = arith.constant 0 : i32
    return %arg0, %c0_i32 : i32, i32
  }
  func.func @transform_1(%arg0: i32) -> (i32, i32) {
    %c0_i32 = arith.constant 0 : i32
    %c0_i32_0 = arith.constant 0 : i32
    %c0_i32_1 = arith.constant 0 : i32
    return %c0_i32, %c0_i32_0 : i32, i32
  }
  func.func @transform_2(%arg0: i32) -> (i32, i32) {
    %c0_i32 = arith.constant 0 : i32
    %c0_i32_0 = arith.constant 0 : i32
    return %arg0, %c0_i32 : i32, i32
  }
}

</mosaic_0001>

<bundles_post_ra>
// kernel: cgcn_forward.3
= control target key start
LH: loop header
LB: loop body
LE: loop exit
PB: predicated region body
PF: predicated region fallthrough
CT: control target
= control target key end

     0   :  { %s50_s0 = inlined_call_operand.vmem [shape: f32[8,128], index: 0, kind: input, shape index: {}]   ;;  %s51_s1 = inlined_call_operand.vmem [shape: f32[1,128], index: 1, kind: input, shape index: {}]   ;;  %s52_s2 = inlined_call_operand.vmem [shape: f32[8,128], index: 2, kind: output, shape index: {}]  }
   0x1   :  { %v11_v0 = vld [vmem:[%s50_s0] sm:$0xff] }
   0x2   :  { %v25_v1 = vld [vmem:[%s51_s1] ss:$0 sm:$0xff] }
   0x3   :  { %v19_v2 = vmul.f32 %v25_v1, %v11_v0 }
   0x5   :  { %20 = vst [vmem:[%s52_s2] sm:$0xff] %v19_v2 }

// kernel: cgcn_forward.2
= control target key start
LH: loop header
LB: loop body
LE: loop exit
PB: predicated region body
PF: predicated region fallthrough
CT: control target
= control target key end

     0   :  { %s463_s0 = inlined_call_operand.vmem [shape: f32[8,128], index: 0, kind: input, shape index: {}]   ;;  %s464_s1 = inlined_call_operand.vmem [shape: f32[16,128], index: 1, kind: input, shape index: {}]   ;;  %s465_s2 = inlined_call_operand.vmem [shape: f32[32,4], index: 2, kind: input, shape index: {}]   ;;  %s466_s3 = inlined_call_operand.vmem [shape: f32[1,128], index: 3, kind: output, shape index: {0}]   ;;  %s467_s4 = inlined_call_operand.hbm [shape: f32[1,1], index: 4, kind: output, shape index: {1}]  }
   0x1   :  { %v22_v0 = vld [vmem:[%s463_s0] sm:$0xff] }
   0x2   :  { %10 = vsyncpa [#allocation4], 0  ;;  %v390_v1 = vmov -inf   ;;  %v23_v2 = vrot.slane %v22_v0, 4  ;;  %s391_s17 = smov 64   ;;  %v49_v11 = vld [vmem:[%s464_s1] sm:$0xff]  ;;  %v141_v34 = vlaneseq }
   0x3   :  { %21 = vst [vmem:[#allocation2] sm:$0x1] %v390_v1  ;;  %v50_v12 = vld [vmem:[%s464_s1 + $0x8] sm:$0xff]  ;;  %v392_v13 = vmov 0.0|0.0   ;;  %s393_s21 = smov 32   ;;  %vm394_vm0 = vmmov 0  }
   0x4   :  { %v24_v3 = vmax.f32 %v22_v0, %v23_v2  ;;  %337 = vmatprep.subr.bf16.mxu0 %v392_v13  ;;  %v338_v14 = vpack.c.bf16 %v50_v12, %v49_v11  ;;  %340 = vmatprep.subr.bf16.mxu1 %v392_v13  ;;  %v395_v17 = vmov 0.0   ;;  %v396_v18 = vmov 0   ;;  %v46_v19 = vld [vmem:[%s465_s2 + $0x8] sm:$0xff]  ;;  %v48_v23 = vld [vmem:[%s465_s2 + $0x18] sm:$0xff]  ;;  %s398_s25 = smov 16   ;;  %v45_v24 = vld [vmem:[%s465_s2] sm:$0xff] }
   0x5   :  { %327 = vmatprep.mubr.msk.f32.mxu0 %vm394_vm0, %v395_v17  ;;  %334 = vmatprep.mubr.msk.f32.mxu1 %vm394_vm0, %v395_v17  ;;  %v397_v20 = vmov 1   ;;  %v399_v25 = vmov 2   ;;  %v47_v26 = vld [vmem:[%s465_s2 + $0x10] sm:$0xff]  ;;  %v400_v29 = vmov 3   ;;  %v142_v36 = vshrl.u32 %v141_v34, 7  ;;  %s401_s5 = smov [#allocation3]  }
   0x6   :  { %v25_v4 = vrot.slane %v24_v3, 2  ;;  %339 = vmatpush3.bf16.msra.mxu0 %v338_v14  ;;  %342 = vmatpush3.bf16.msra.mxu1 %v338_v14  ;;  %v279_v11 = vand.u32 127, %v141_v34  ;;  %vm284_vm2 = vcmask 1040384   ;;  %s306_s6 = sshll.u32 %s401_s5, 4  ;;  %vm296_vm3 = vcmask 0   ;;  %s307_s6 = int_to_ptr.vmem [resolvable:$true] %s306_s6 }
   0x7   :  { %357 = vset.pattern.permute.xlu1 %v396_v18  ;;  %358 = vset.pattern.permute.xlu0 %v396_v18  ;;  %v143_v39 = vsub.s32 0, %v142_v36  ;;  %s370_s8 = scalar_lea.vmem %s307_s6, 32  ;;  %p371_p1 = scmp.lt.s32.totalorder %s307_s6, %s307_s6 }
   0x8   :  { %v26_v5 = vmax.f32 %v24_v3, %v25_v4  ;;  %vm280_vm1 = vcmp.lt.s32.totalorder %v279_v11, 16 }
   0xa   :  { %v27_v6 = vrot.slane %v26_v5, 1  ;;  %v29_v7 = vld [vmem:[#allocation2] sm:$0x1] }
   0xc   :  { %v28_v8 = vmax.f32 %v26_v5, %v27_v6 }
   0xe   :  { %v30_v9 = vmax.f32 %v29_v7, %v28_v8 }
  0x10   :  { %31 = vst [vmem:[#allocation2] sm:$0x1] %v30_v9 }
  0x17   :  { %v35_v10 = vld [vmem:[#allocation2] sm:$0x1] }
  0x18   :  { %36 = vrot.lane.b32.xlu0 %v35_v10, %s391_s17 }
  0x8a   :  { %v37_v15 = vpop.permute.xlu0 %36 }
  0x8b   :  { %v38_v16 = vmax.f32 %v35_v10, %v37_v15 }
  0x8d   :  { %39 = vrot.lane.b32.xlu0 %v38_v16, %s393_s21 }
  0x91   :  { %128 = vperm.xlu0 %358, %v46_v19  }
  0x95   :  { %360 = vset.pattern.permute.xlu0 %v397_v20 }
  0x96   :  { %154 = vperm.xlu0 %360, %v46_v19  }
  0x9a   :  { %162 = vperm.xlu0 %360, %v48_v23  }
  0x9e   :  { %364 = vset.pattern.permute.xlu0 %v399_v25 }
  0x9f   :  { %178 = vperm.xlu0 %364, %v46_v19  }
  0xa3   :  { %365 = vset.pattern.permute.xlu0 %v400_v29 }
  0xa4   :  { %203 = vperm.xlu0 %365, %v45_v24  }
  0xff   :  { %v40_v21 = vpop.permute.xlu0 %39 }
 0x100   :  { %v41_v22 = vmax.f32 %v38_v16, %v40_v21 }
 0x102   :  { %42 = vrot.lane.b32.xlu1 %v41_v22, %s398_s25 }
 0x106   :  { %123 = vperm.xlu1 %357, %v45_v24  }
 0x10a   :  { %133 = vperm.xlu1 %357, %v47_v26  }
 0x10e   :  { %359 = vset.pattern.permute.xlu1 %v397_v20 }
 0x10f   :  { %150 = vperm.xlu1 %359, %v45_v24  }
 0x110   :  { %v129_v35 = vpop.permute.xlu0 %128 }
 0x113   :  { %361 = vset.pattern.permute.xlu1 %v396_v18 }
 0x114   :  { %138 = vperm.xlu1 %361, %v48_v23  }
 0x115   :  { %v155_v38 = vpop.permute.xlu0 %154 }
 0x118   :  { %362 = vset.pattern.permute.xlu1 %v397_v20 }
 0x119   :  { %158 = vperm.xlu1 %362, %v47_v26   ;;  %v163_v44 = vpop.permute.xlu0 %162 }
 0x11d   :  { %363 = vset.pattern.permute.xlu1 %v399_v25 }
 0x11e   :  { %174 = vperm.xlu1 %363, %v45_v24   ;;  %v179_v54 = vpop.permute.xlu0 %178 }
 0x122   :  { %182 = vperm.xlu1 %363, %v47_v26  }
 0x123   :  { %v204_v9 = vpop.permute.xlu0 %203 }
 0x126   :  { %186 = vperm.xlu1 %363, %v48_v23  }
 0x174   :  { %v43_v27 = vpop.permute.xlu1 %42 }
 0x175   :  { %v44_v28 = vmax.f32 %v41_v22, %v43_v27 }
 0x177   :  { %328 = vmatmul.mubr.f32.vlgmr.msra.gmra.mrb[0].mxu0 %v44_v28 }
 0x185   :  { %v124_v30 = vpop.permute.xlu1 %123 }
 0x189   :  { %v134_v31 = vpop.permute.xlu1 %133 }
 0x18e   :  { %v151_v32 = vpop.permute.xlu1 %150 }
 0x193   :  { %v139_v33 = vpop.permute.xlu1 %138 }
 0x198   :  { %v159_v37 = vpop.permute.xlu1 %158 }
 0x19d   :  { %v175_v40 = vpop.permute.xlu1 %174 }
 0x1a1   :  { %v183_v53 = vpop.permute.xlu1 %182 }
 0x1a5   :  { %v187_v63 = vpop.permute.xlu1 %186 }
 0x24a   :  { %v117_v41 = vpop.f32.mrb[0].mxu0 }
 0x24b   :  { %v144_v42 = vrot.slane %v117_v41, %v143_v39  ;;  %v329_v43 = vpop.f32.mrb[1].mxu0 }
 0x24d   :  { %v145_v45 = vmul.f32 %v144_v42, %v124_v30  ;;  %v147_v46 = vmul.f32 %v144_v42, %v134_v31  ;;  %v148_v47 = vmul.f32 %v144_v42, %v139_v33  ;;  %v146_v48 = vmul.f32 %v144_v42, %v129_v35 }
 0x24f   :  { %v167_v49 = vadd.f32 %v159_v37, %v147_v46  ;;  %v168_v50 = vadd.f32 %v163_v44, %v148_v47  ;;  %v165_v51 = vadd.f32 %v151_v32, %v145_v45  ;;  %v166_v52 = vadd.f32 %v155_v38, %v146_v48 }
 0x251   :  { %v171_v55 = vmax.f32 %v167_v49, 0.0  ;;  %v169_v56 = vmax.f32 %v165_v51, 0.0  ;;  %v170_v57 = vmax.f32 %v166_v52, 0.0  ;;  %v172_v58 = vmax.f32 %v168_v50, 0.0 }
 0x253   :  { %v189_v59 = vmul.f32 %v175_v40, %v169_v56  ;;  %v190_v60 = vmul.f32 %v179_v54, %v170_v57  ;;  %v191_v61 = vmul.f32 %v183_v53, %v171_v55  ;;  %v192_v0 = vmul.f32 %v187_v63, %v172_v58 }
 0x255   :  { %v193_v62 = vadd.f32 %v190_v60, %v189_v59 }
 0x257   :  { %v194_v1 = vadd.f32 %v193_v62, %v191_v61 }
 0x259   :  { %v195_v2 = vadd.f32 %v194_v1, %v192_v0 }
 0x25b   :  { %v196_v3 = vrot.slane %v195_v2, 4 }
 0x25d   :  { %v197_v4 = vadd.f32 %v196_v3, %v195_v2 }
 0x25f   :  { %v198_v5 = vrot.slane %v197_v4, 2 }
 0x261   :  { %v199_v6 = vadd.f32 %v198_v5, %v197_v4 }
 0x263   :  { %v200_v7 = vrot.slane %v199_v6, 1 }
 0x265   :  { %v201_v8 = vadd.f32 %v200_v7, %v199_v6 }
 0x267   :  { %335 = vmatmul.mubr.f32.vlgmr.msra.gmra.mrb[0].mxu1 %v201_v8 }
 0x33a   :  { %v272_v10 = vpop.f32.mrb[0].mxu1 }
 0x33b   :  { %v273_v12 = vadd.f32 %v272_v10, %v204_v9  ;;  %v336_v13 = vpop.f32.mrb[1].mxu1 }
 0x33d   :  { %v276_v14 = vmax.f32 %v273_v12, 0.0 }
 0x33f   :  { %277 = vst [vmem:[%s466_s3] sm:$0x1] %v276_v14  ;;  %v316_v15 = vadd.f32 -1.0, %v276_v14  ;;  %s366_s3 = scalar_lea.vmem %s307_s6, 16 }
 0x340   :  { %p367_p0 = scmp.ne.s32.totalorder %s307_s6, %s366_s3  ;;  %p372_p2 = scmp.lt.s32.totalorder %s370_s8, %s366_s3 }
 0x341   :  { %v282_v16 = vsel %vm280_vm1, %v316_v15, 0.0 }
 0x342   :  { %v283_v17 = vmul.f32 %v282_v16, %v282_v16  ;;  %p373_p3 = por %p372_p2, %p371_p1 }
 0x344   :  { %v285_v18 = vsel %vm284_vm2, %v283_v17, 0.0  ;;  %p374_p4 = pnand %p373_p3, %p367_p0 }
 0x345   :  { %286 = vadd.xlane.f32.xlu1 %v285_v18 }
 0x3d2   :  { %v287_v19 = vpop.xlane.xlu1 %286 }
 0x3d3   :  { %v288_v20 = vrot.slane %v287_v19, 4 }
 0x3d5   :  { %v289_v21 = vadd.f32 %v288_v20, %v287_v19 }
 0x3d7   :  { %v290_v22 = vrot.slane %v289_v21, 2 }
 0x3d9   :  { %v291_v23 = vadd.f32 %v290_v22, %v289_v21 }
 0x3db   :  { %v292_v24 = vrot.slane %v291_v23, 1 }
 0x3dd   :  { %v293_v25 = vadd.f32 %v292_v24, %v291_v23 }
 0x3df   :  { %343 = vpush %v293_v25 }
 0x410   :  { %s344_s7 = spop %343 }
 0x411   :  { %v295_v26 = vstv %s344_s7 }
 0x412   :  { %297 = vst.msk [vmem:[#allocation3] sm:$0x1] %vm296_vm3, %v295_v26 }
 0x413   :  { %377 = shalt.err (!%p374_p4)
}
 0x414   :  { %s378_s11 = scalar_lea.hbm %s467_s4, 16 }
 0x415   :  { %p379_p5 = scmp.ne.s32.totalorder %s467_s4, %s378_s11  ;;  %p382_p6 = scmp.lt.u32.totalorder %s378_s11, %s467_s4 }
 0x417   :  { %p384_p7 = pnand %p382_p6, %p379_p5 }
 0x419   :  { %387 = shalt.err (!%p384_p7)
}
 0x41a   :  { %309 = dma.vmem_to_hbm [thread:$0]  %s307_s6, 16, %s467_s4, [#allocation4]  }
 0x41b   :  { %388 = dma.done.wait [#allocation4], 16  }
 0x41c   :  { %389 = vsyncadd [#allocation4], 4294967280 }
 0x41d   :  { %315 = vsyncpa [#allocation4], 1 }

</bundles_post_ra>
